<compile_context>
chip_gen: v7x
topology: tpu7x:2x2x1
jax: 0.10.0
libtpu: 0.0.40
codegen_flags: <defaults>
</compile_context>

<pallas_src>
from functools import partial

import jax
import jax.numpy as jnp
from jax.experimental import pallas as pl
from jax.experimental.pallas import tpu as pltpu

N_FEATURES = 3
TILE_N = 8192  # lanes per grid step; multiple of 128, fits VMEM everywhere


def ridge_kernel(xt_ref, w_ref, o_ref):
    # xt_ref: (3, tile) f32 in VMEM  (features on sublanes, rows on lanes)
    # w_ref:  (3,)      f32 in SMEM  (scalar reads)
    # o_ref:  (1, tile) f32 in VMEM  (lane-dense output row)
    o_ref[...] = (xt_ref[0:1, :] * w_ref[0]
                  + xt_ref[1:2, :] * w_ref[1]
                  + xt_ref[2:3, :] * w_ref[2])


@partial(jax.jit, static_argnames=("tile_n",))
def ridge_forward(x_t, w, tile_n=TILE_N):
    """x_t: (3, N) float32 feature-major layout, w: (3,) float32 -> (N,) f32.

    y[i] = x_t[0,i]*w[0] + x_t[1,i]*w[1] + x_t[2,i]*w[2]
    """
    f, n = x_t.shape
    assert f == N_FEATURES
    x_t = x_t.astype(jnp.float32)
    w = w.astype(jnp.float32)

    # Single block for small N (block == full dims), TILE_N-wide grid otherwise.
    tile = min(tile_n, n)
    grid = (pl.cdiv(n, tile),)

    out = pl.pallas_call(
        ridge_kernel,
        out_shape=jax.ShapeDtypeStruct((1, n), jnp.float32),
        grid=grid,
        in_specs=[
            pl.BlockSpec((N_FEATURES, tile), lambda i: (0, i)),          # x_t tile
            pl.BlockSpec(memory_space=pltpu.MemorySpace.SMEM),           # w (full, scalar)
        ],
        out_specs=pl.BlockSpec((1, tile), lambda i: (0, i)),
        compiler_params=pltpu.CompilerParams(
            dimension_semantics=("parallel",),   # v7x: shard row grid over 2 TCs
        ),
    )(x_t, w)

    return out[0, :]


def make_features_T(feature1_col):
    """Build the (3, N) feature matrix directly in feature-major layout
    (no transpose of an (N,3) array)."""
    f = feature1_col.reshape(-1).astype(jnp.float32)
    return jnp.stack((f, f ** 2, f ** 3), axis=0)   # (3, N)


if __name__ == "__main__":
    # ---- Exact module inputs: feature1 = linspace(-20, 20, 4) ----
    n_rows = 4
    feature1 = jnp.linspace(-20.0, 20.0, n_rows).reshape(-1, 1)
    x_t = make_features_T(feature1)                 # (3, 4), feature-major
    x_train_ref = x_t.T                             # (4, 3), only for the reference check

    # Parameters exactly as in __init__: w = zeros(num_features), b = zeros(1)
    w = jnp.zeros((N_FEATURES,), jnp.float32)
    b = jnp.zeros((1,), jnp.float32)  # unused in forward (kept for shape parity)

    preds = jax.block_until_ready(ridge_forward(x_t, w))
    ref = x_train_ref @ w
    assert preds.shape == (n_rows,)
    assert jnp.allclose(preds, ref, atol=1e-5), (preds, ref)

    # ---- Nontrivial check: deterministic random weights, same kernel path ----
    key = jax.random.PRNGKey(0)
    w_rand = jax.random.normal(key, (N_FEATURES,), jnp.float32)
    preds_rand = jax.block_until_ready(ridge_forward(x_t, w_rand))
    ref_rand = x_train_ref @ w_rand
    assert jnp.allclose(preds_rand, ref_rand, rtol=1e-5, atol=1e-4), (preds_rand, ref_rand)

    # ---- Exercise the gridded path (multi-tile + partial last tile) ----
    n_big = TILE_N + 640                            # 2 grid steps, masked tail
    f_big = jax.random.uniform(jax.random.PRNGKey(0), (n_big,),
                               jnp.float32, minval=-20.0, maxval=20.0)
    x_t_big = make_features_T(f_big)                # (3, n_big)
    preds_big = jax.block_until_ready(ridge_forward(x_t_big, w_rand))
    ref_big = x_t_big.T @ w_rand
    assert preds_big.shape == (n_big,)
    assert jnp.allclose(preds_big, ref_big, rtol=1e-5, atol=1e-3), "gridded path mismatch"

    print("KERNEL_OK")
</pallas_src>

<mosaic_0001>
module attributes {stable_mosaic.version = 11 : i64} {
  func.func @ridge_kernel(%arg0: i32, %arg1: memref<3x4xf32, #tpu.memory_space<vmem>>, %arg2: memref<3xf32, #tpu.memory_space<smem>>, %arg3: memref<1x4xf32, #tpu.memory_space<vmem>>) attributes {dimension_semantics = [#tpu.dimension_semantics<parallel>], iteration_bounds = array<i64: 1>, scalar_prefetch = 0 : i64, scratch_operands = 0 : i64, tpu.core_type = #tpu.core_type<tc>, window_params = [{transform_indices = @transform_0, window_bounds = array<i64: 3, 4>}, {transform_indices = @transform_1, window_bounds = array<i64: 3>}, {transform_indices = @transform_2, window_bounds = array<i64: 1, 4>}]} {
    %c0 = arith.constant 0 : index
    %c0_0 = arith.constant 0 : index
    %0 = vector.load %arg1[%c0, %c0_0] : memref<3x4xf32, #tpu.memory_space<vmem>>, vector<1x4xf32>
    %c0_1 = arith.constant 0 : index
    %1 = memref.load %arg2[%c0_1] : memref<3xf32, #tpu.memory_space<smem>>
    %2 = vector.broadcast %1 : f32 to vector<1x4xf32>
    %3 = arith.mulf %0, %2 : vector<1x4xf32>
    %c1 = arith.constant 1 : index
    %c0_2 = arith.constant 0 : index
    %4 = vector.load %arg1[%c1, %c0_2] : memref<3x4xf32, #tpu.memory_space<vmem>>, vector<1x4xf32>
    %c1_3 = arith.constant 1 : index
    %5 = memref.load %arg2[%c1_3] : memref<3xf32, #tpu.memory_space<smem>>
    %6 = vector.broadcast %5 : f32 to vector<1x4xf32>
    %7 = arith.mulf %4, %6 : vector<1x4xf32>
    %8 = arith.addf %3, %7 : vector<1x4xf32>
    %c2 = arith.constant 2 : index
    %c0_4 = arith.constant 0 : index
    %9 = vector.load %arg1[%c2, %c0_4] : memref<3x4xf32, #tpu.memory_space<vmem>>, vector<1x4xf32>
    %c2_5 = arith.constant 2 : index
    %10 = memref.load %arg2[%c2_5] : memref<3xf32, #tpu.memory_space<smem>>
    %11 = vector.broadcast %10 : f32 to vector<1x4xf32>
    %12 = arith.mulf %9, %11 : vector<1x4xf32>
    %13 = arith.addf %8, %12 : vector<1x4xf32>
    %c0_6 = arith.constant 0 : index
    %c0_7 = arith.constant 0 : index
    %14 = vector.load %arg3[%c0_6, %c0_7] : memref<1x4xf32, #tpu.memory_space<vmem>>, vector<1x4xf32>
    tpu.vector_store %arg3[%c0_6, %c0_7], %13 {strides = array<i32>} : memref<1x4xf32, #tpu.memory_space<vmem>>, vector<1x4xf32>,
    return
  }
  func.func @transform_0(%arg0: i32) -> (i32, i32) {
    %c0_i32 = arith.constant 0 : i32
    %c0_i32_0 = arith.constant 0 : i32
    return %c0_i32, %arg0 : i32, i32
  }
  func.func @transform_1(%arg0: i32) -> i32 {
    %c0_i32 = arith.constant 0 : i32
    %c0_i32_0 = arith.constant 0 : i32
    return %c0_i32 : i32
  }
  func.func @transform_2(%arg0: i32) -> (i32, i32) {
    %c0_i32 = arith.constant 0 : i32
    %c0_i32_0 = arith.constant 0 : i32
    return %c0_i32, %arg0 : i32, i32
  }
}

</mosaic_0001>

<bundles_post_ra>
// kernel: ridge_forward.1
= control target key start
LH: loop header
LB: loop body
LE: loop exit
PB: predicated region body
PF: predicated region fallthrough
CT: control target
= control target key end

     0   :  { %7 = vsyncpa [#allocation3], 0  ;;  %s181_s0 = inlined_call_operand.hbm [shape: f32[3,4], index: 0, kind: input, shape index: {}]   ;;  %s182_s1 = inlined_call_operand.vmem [shape: f32[3], index: 1, kind: input, shape index: {}]   ;;  %s183_s2 = inlined_call_operand.hbm [shape: f32[1,4], index: 2, kind: output, shape index: {}]  }
   0x1   :  { %8 = vsyncpa [#allocation5], 0 }
   0x2   :  { %9 = vsyncpa [#allocation4], 0  ;;  %s26_s11 = sshll.u32 %s182_s1, 4  ;;  %s136_s12 = smov [#allocation2]   ;;  %s27_s11 = int_to_ptr.vmem [resolvable:$true] %s26_s11 }
   0x3   :  { %s16_s13 = sshll.u32 %s136_s12, 4  ;;  %s74_s16 = scalar_lea.hbm %s181_s0, 64  ;;  %s17_s13 = int_to_ptr.vmem [resolvable:$true] %s16_s13 }
   0x4   :  { %p75_p0 = scmp.ne.s32.totalorder %s181_s0, %s74_s16  ;;  %p78_p1 = scmp.lt.u32.totalorder %s74_s16, %s181_s0 }
   0x6   :  { %p80_p2 = pnand %p78_p1, %p75_p0 }
   0x8   :  { %83 = shalt.err (!%p80_p2)
}
   0x9   :  { %s84_s21 = scalar_lea.vmem %s17_s13, 64  ;;  %p89_p4 = scmp.lt.s32.totalorder %s17_s13, %s17_s13 }
   0xa   :  { %p85_p3 = scmp.ne.s32.totalorder %s17_s13, %s84_s21  ;;  %p90_p5 = scmp.lt.s32.totalorder %s84_s21, %s84_s21 }
   0xc   :  { %p91_p6 = por %p90_p5, %p89_p4 }
   0xe   :  { %p92_p7 = pnand %p91_p6, %p85_p3 }
  0x10   :  { %95 = shalt.err (!%p92_p7)
}
  0x11   :  { %19 = dma.hbm_to_vmem [thread:$0]  %s181_s0, 64, %s17_s13, [#allocation3]  }
  0x12   :  { %s96_s23 = scalar_lea.vmem %s27_s11, 16  ;;  %p101_p9 = scmp.lt.s32.totalorder %s27_s11, %s27_s11 }
  0x13   :  { %p97_p8 = scmp.ne.s32.totalorder %s27_s11, %s96_s23  ;;  %p102_p10 = scmp.lt.s32.totalorder %s96_s23, %s96_s23 }
  0x15   :  { %p103_p11 = por %p102_p10, %p101_p9 }
  0x17   :  { %p104_p12 = pnand %p103_p11, %p97_p8 }
  0x19   :  { %107 = shalt.err (!%p104_p12)
}
  0x1a   :  { %s137_s24 = smov [#allocation6]  }
  0x1b   :  { %29 = dma.vmem_to_smem %s27_s11, 16, %s137_s24, [#allocation5]  }
  0x1c   :  { %130 = dma.done.wait [#allocation3], 64  }
  0x1d   :  { %131 = vsyncadd [#allocation3], 4294967232 }
  0x1e   :  { %132 = dma.done.wait [#allocation5], 16  }
  0x1f   :  { %133 = vsyncadd [#allocation5], 4294967280 }
  0x20   :  { %36 = sfence }
  0x21   :  { %s38_s25 = sld [smem:[#allocation6]]  ;;  %s69_s26 = sld [smem:[#allocation6 + $0x1]]  ;;  %v37_v0 = vld [vmem:[#allocation2] sm:$0x1]  ;;  %v41_v1 = vld [vmem:[#allocation2 + $0x1] sm:$0x1] }
  0x22   :  { %s70_s27 = sld [smem:[#allocation6 + $0x2]]  ;;  %v46_v2 = vld [vmem:[#allocation2 + $0x2] sm:$0x1]  ;;  %s138_s0 = smov [#allocation7]   ;;  %vm51_vm0 = vcmask 24576  }
  0x23   :  { %s59_s28 = sshll.u32 %s138_s0, 4  ;;  %s60_s28 = int_to_ptr.vmem [resolvable:$true] %s59_s28 }
  0x24   :  { %s108_s29 = scalar_lea.vmem %s60_s28, 16  ;;  %s112_s30 = scalar_lea.vmem %s60_s28, 32 }
  0x25   :  { %p109_p13 = scmp.ne.s32.totalorder %s60_s28, %s108_s29  ;;  %p113_p0 = scmp.lt.s32.totalorder %s60_s28, %s60_s28 }
  0x26   :  { %p114_p1 = scmp.lt.s32.totalorder %s112_s30, %s108_s29 }
  0x27   :  { %v39_v3 = vstv %s38_s25  ;;  %v43_v5 = vstv %s69_s26 }
  0x28   :  { %v40_v4 = vmul.f32 %v39_v3, %v37_v0  ;;  %v48_v6 = vstv %s70_s27  ;;  %v44_v7 = vmul.f32 %v43_v5, %v41_v1  ;;  %p115_p2 = por %p114_p1, %p113_p0 }
  0x29   :  { %v49_v8 = vmul.f32 %v48_v6, %v46_v2 }
  0x2a   :  { %v45_v9 = vadd.f32 %v44_v7, %v40_v4  ;;  %p116_p3 = pnand %p115_p2, %p109_p13 }
  0x2c   :  { %v50_v10 = vadd.f32 %v49_v8, %v45_v9 }
  0x2e   :  { %52 = vst.msk [vmem:[#allocation7] sm:$0x1] %vm51_vm0, %v50_v10 }
  0x2f   :  { %119 = shalt.err (!%p116_p3)
}
  0x30   :  { %s120_s5 = scalar_lea.hbm %s183_s2, 16 }
  0x31   :  { %p121_p4 = scmp.ne.s32.totalorder %s183_s2, %s120_s5  ;;  %p124_p5 = scmp.lt.u32.totalorder %s120_s5, %s183_s2 }
  0x33   :  { %p126_p6 = pnand %p124_p5, %p121_p4 }
  0x35   :  { %129 = shalt.err (!%p126_p6)
}
  0x36   :  { %62 = dma.vmem_to_hbm [thread:$0]  %s60_s28, 16, %s183_s2, [#allocation4]  }
  0x37   :  { %134 = dma.done.wait [#allocation4], 16  }
  0x38   :  { %135 = vsyncadd [#allocation4], 4294967280 }
  0x39   :  { %66 = vsyncpa [#allocation3], 1 }
  0x3a   :  { %67 = vsyncpa [#allocation4], 1 }
  0x3b   :  { %68 = vsyncpa [#allocation5], 1 }

</bundles_post_ra>
